<compile_context>
chip_gen: v5e
topology: v5e:2x2
jax: 0.10.0
libtpu: 0.0.40
codegen_flags: <defaults>
</compile_context>

<pallas_src>
import jax
import jax.numpy as jnp
from jax.experimental import pallas as pl
from jax.experimental.pallas import tpu as pltpu

ART_COMPONENTS = 50
HIDDEN = 128


def _round_up(x, m):
    return ((x + m - 1) // m) * m


def disc_kernel(y_ref, w1_ref, b1_ref, w2_ref, b2_ref, o_ref):
    # fc1 on the MXU, single pass: (128, 50) bf16 @ (50, TB) bf16 -> (128, TB)
    # f32.  Batch lands directly on the lane axis (no transpose needed).
    h = jnp.dot(w1_ref[...], y_ref[...], preferred_element_type=jnp.float32)
    # Bias (128, 1) broadcast across lanes + ReLU on the VPU, all f32.
    h = jnp.maximum(h + b1_ref[...], 0.0)
    # fc2 (out_features == 1): VPU multiply + sublane (XLU) reduce over the
    # hidden axis instead of a 1-column MXU matmul.  f32 throughout.
    z = jnp.sum(h * w2_ref[...], axis=0, keepdims=True) + b2_ref[0, 0]  # (1, TB)
    # Lane-dense store: batch lives on the lane axis of the output block.
    o_ref[...] = jax.nn.sigmoid(z)


def _choose_blocking(B, block_b=None):
    if block_b is not None:
        return block_b, _round_up(B, block_b)
    # Aim for >= 2 grid steps (uses both v7x TensorCores) with block_b in
    # [128, 1024]; padded waste is bounded by one block.
    g = max(2, pl.cdiv(B, 1024))
    blk = min(1024, _round_up(pl.cdiv(B, g), 128))
    return blk, _round_up(B, blk)


def disc_forward(y, w1, b1, w2, b2, *, block_b=None):
    """Forward pass.

    y:  (B, 50)   f32
    w1: (128, 50) f32  (PyTorch fc1.weight layout)
    b1: (128, 1)  f32  (fc1.bias as a column)
    w2: (128, 1)  f32  (fc2.weight transposed)
    b2: (1, 1)    f32  (fc2.bias)
    returns (B, 1) f32
    """
    B = y.shape[0]
    block_b, Bp = _choose_blocking(B, block_b)

    # Pre-transpose y so the kernel's fc1 RHS is (50, B): batch on the lane
    # axis, MXU-native layout.  Cast fc1 operands to bf16 (single-pass MXU,
    # half the y DMA bytes); accumulation stays f32 inside the kernel.
    y_t = y.T.astype(jnp.bfloat16)                       # (50, B)
    if Bp != B:
        y_t = jnp.pad(y_t, ((0, 0), (0, Bp - B)))
    w1_bf = w1.astype(jnp.bfloat16)                      # (128, 50)

    out_row = pl.pallas_call(
        disc_kernel,
        out_shape=jax.ShapeDtypeStruct((1, Bp), jnp.float32),
        grid=(Bp // block_b,),
        in_specs=[
            pl.BlockSpec((ART_COMPONENTS, block_b), lambda i: (0, i)),    # y^T tile
            pl.BlockSpec((HIDDEN, ART_COMPONENTS), lambda i: (0, 0)),     # w1 (resident)
            pl.BlockSpec((HIDDEN, 1), lambda i: (0, 0)),                  # b1 (resident)
            pl.BlockSpec((HIDDEN, 1), lambda i: (0, 0)),                  # w2 (resident)
            pl.BlockSpec((1, 1), lambda i: (0, 0),
                         memory_space=pltpu.MemorySpace.SMEM),            # b2 scalar
        ],
        out_specs=pl.BlockSpec((1, block_b), lambda i: (0, i)),
        compiler_params=pltpu.CompilerParams(
            dimension_semantics=("parallel",),
        ),
    )(y_t, w1_bf, b1, w2, b2)

    # Drop padded columns and restore the module's (B, 1) output layout.
    return out_row[0, :B].reshape(B, 1)


def init_params(key):
    # PyTorch Linear default init: U(-1/sqrt(fan_in), 1/sqrt(fan_in)).
    k1, k2, k3, k4 = jax.random.split(key, 4)
    lim1 = 1.0 / jnp.sqrt(ART_COMPONENTS)
    lim2 = 1.0 / jnp.sqrt(HIDDEN)
    w1 = jax.random.uniform(k1, (HIDDEN, ART_COMPONENTS), jnp.float32, -lim1, lim1)
    b1 = jax.random.uniform(k2, (HIDDEN, 1), jnp.float32, -lim1, lim1)
    w2 = jax.random.uniform(k3, (HIDDEN, 1), jnp.float32, -lim2, lim2)
    b2 = jax.random.uniform(k4, (1, 1), jnp.float32, -lim2, lim2)
    return w1, b1, w2, b2


def disc_reference(y, w1, b1, w2, b2):
    # Strict-f32 reference (matches the PyTorch forward semantics).
    h = jnp.maximum(
        jnp.dot(y, w1.T, precision=jax.lax.Precision.HIGHEST) + b1.T, 0.0)
    z = jnp.dot(h, w2, precision=jax.lax.Precision.HIGHEST) + b2
    return jax.nn.sigmoid(z)


if __name__ == "__main__":
    key = jax.random.PRNGKey(0)
    k_in, k_in2, k_params = jax.random.split(key, 3)
    w1, b1, w2, b2 = init_params(k_params)

    # Small demo batch (single grid step after padding to 128 lanes).
    B1 = 8
    y1 = jax.random.normal(k_in, (B1, ART_COMPONENTS), jnp.float32)
    out1 = jax.block_until_ready(disc_forward(y1, w1, b1, w2, b2))
    ref1 = disc_reference(y1, w1, b1, w2, b2)
    assert out1.shape == (B1, 1), out1.shape
    assert jnp.allclose(out1, ref1, atol=2e-3, rtol=0.0), (
        "mismatch vs reference", float(jnp.max(jnp.abs(out1 - ref1))))

    # Non-multiple batch: exercises the >=2-step parallel grid and the
    # padded-column slicing.
    B2 = 300
    y2 = jax.random.normal(k_in2, (B2, ART_COMPONENTS), jnp.float32)
    out2 = jax.block_until_ready(disc_forward(y2, w1, b1, w2, b2))
    ref2 = disc_reference(y2, w1, b1, w2, b2)
    assert out2.shape == (B2, 1), out2.shape
    assert jnp.allclose(out2, ref2, atol=2e-3, rtol=0.0), (
        "mismatch vs reference", float(jnp.max(jnp.abs(out2 - ref2))))

    print("KERNEL_OK")
</pallas_src>

<mosaic_0001>
module attributes {stable_mosaic.version = 11 : i64} {
  func.func @disc_kernel(%arg0: i32, %arg1: memref<50x128xbf16, #tpu.memory_space<vmem>>, %arg2: memref<128x50xbf16, #tpu.memory_space<vmem>>, %arg3: memref<128x1xf32, #tpu.memory_space<vmem>>, %arg4: memref<128x1xf32, #tpu.memory_space<vmem>>, %arg5: memref<1x1xf32, #tpu.memory_space<smem>>, %arg6: memref<1x128xf32, #tpu.memory_space<vmem>>) attributes {dimension_semantics = [#tpu.dimension_semantics<parallel>], iteration_bounds = array<i64: 1>, scalar_prefetch = 0 : i64, scratch_operands = 0 : i64, tpu.core_type = #tpu.core_type<tc>, window_params = [{transform_indices = @transform_0, window_bounds = array<i64: 50, 128>}, {pipeline_mode = #tpu.pipeline_mode<synchronous>, transform_indices = @transform_1, window_bounds = array<i64: 128, 50>}, {pipeline_mode = #tpu.pipeline_mode<synchronous>, transform_indices = @transform_2, window_bounds = array<i64: 128, 1>}, {pipeline_mode = #tpu.pipeline_mode<synchronous>, transform_indices = @transform_3, window_bounds = array<i64: 128, 1>}, {transform_indices = @transform_4, window_bounds = array<i64: 1, 1>}, {transform_indices = @transform_5, window_bounds = array<i64: 1, 128>}]} {
    %c0 = arith.constant 0 : index
    %c0_0 = arith.constant 0 : index
    %0 = vector.load %arg2[%c0, %c0_0] : memref<128x50xbf16, #tpu.memory_space<vmem>>, vector<128x50xbf16>
    %c0_1 = arith.constant 0 : index
    %c0_2 = arith.constant 0 : index
    %1 = vector.load %arg1[%c0_1, %c0_2] : memref<50x128xbf16, #tpu.memory_space<vmem>>, vector<50x128xbf16>
    %cst = arith.constant dense<0.000000e+00> : vector<128x128xf32>
    %2 = tpu.matmul %0, %1, %cst {dimension_numbers = #tpu.dot_dimension_numbers<[1], [0], [0], [1], [0, 0, 1, 1], [], []>} : vector<128x50xbf16>, vector<50x128xbf16>, vector<128x128xf32> -> vector<128x128xf32>
    %c0_3 = arith.constant 0 : index
    %c0_4 = arith.constant 0 : index
    %3 = vector.load %arg3[%c0_3, %c0_4] : memref<128x1xf32, #tpu.memory_space<vmem>>, vector<128x1xf32>
    %4 = vector.broadcast %3 : vector<128x1xf32> to vector<128x128xf32>
    %5 = arith.addf %2, %4 : vector<128x128xf32>
    %cst_5 = arith.constant 0.000000e+00 : f32
    %6 = vector.broadcast %cst_5 : f32 to vector<128x128xf32>
    %7 = arith.maximumf %5, %6 : vector<128x128xf32>
    %c0_6 = arith.constant 0 : index
    %c0_7 = arith.constant 0 : index
    %8 = vector.load %arg4[%c0_6, %c0_7] : memref<128x1xf32, #tpu.memory_space<vmem>>, vector<128x1xf32>
    %9 = vector.broadcast %8 : vector<128x1xf32> to vector<128x128xf32>
    %10 = arith.mulf %7, %9 : vector<128x128xf32>
    %cst_8 = arith.constant dense<0.000000e+00> : vector<128xf32>
    %11 = vector.multi_reduction <add>, %10, %cst_8 [0] : vector<128x128xf32> to vector<128xf32>
    %12 = vector.shape_cast %11 : vector<128xf32> to vector<1x128xf32>
    %c0_9 = arith.constant 0 : index
    %c0_10 = arith.constant 0 : index
    %13 = memref.load %arg5[%c0_9, %c0_10] : memref<1x1xf32, #tpu.memory_space<smem>>
    %14 = vector.broadcast %13 : f32 to vector<1x128xf32>
    %15 = arith.addf %12, %14 : vector<1x128xf32>
    %16 = arith.negf %15 : vector<1x128xf32>
    %17 = math.exp %16 : vector<1x128xf32>
    %cst_11 = arith.constant 1.000000e+00 : f32
    %18 = vector.broadcast %cst_11 : f32 to vector<1x128xf32>
    %19 = arith.addf %18, %17 : vector<1x128xf32>
    %20 = arith.divf %18, %19 : vector<1x128xf32>
    %c0_12 = arith.constant 0 : index
    %c0_13 = arith.constant 0 : index
    %21 = vector.load %arg6[%c0_12, %c0_13] : memref<1x128xf32, #tpu.memory_space<vmem>>, vector<1x128xf32>
    tpu.vector_store %arg6[%c0_12, %c0_13], %20 {strides = array<i32>} : memref<1x128xf32, #tpu.memory_space<vmem>>, vector<1x128xf32>,
    return
  }
  func.func @transform_0(%arg0: i32) -> (i32, i32) {
    %c0_i32 = arith.constant 0 : i32
    %c0_i32_0 = arith.constant 0 : i32
    return %c0_i32, %arg0 : i32, i32
  }
  func.func @transform_1(%arg0: i32) -> (i32, i32) {
    %c0_i32 = arith.constant 0 : i32
    %c0_i32_0 = arith.constant 0 : i32
    %c0_i32_1 = arith.constant 0 : i32
    return %c0_i32, %c0_i32_0 : i32, i32
  }
  func.func @transform_2(%arg0: i32) -> (i32, i32) {
    %c0_i32 = arith.constant 0 : i32
    %c0_i32_0 = arith.constant 0 : i32
    %c0_i32_1 = arith.constant 0 : i32
    return %c0_i32, %c0_i32_0 : i32, i32
  }
  func.func @transform_3(%arg0: i32) -> (i32, i32) {
    %c0_i32 = arith.constant 0 : i32
    %c0_i32_0 = arith.constant 0 : i32
    %c0_i32_1 = arith.constant 0 : i32
    return %c0_i32, %c0_i32_0 : i32, i32
  }
  func.func @transform_4(%arg0: i32) -> (i32, i32) {
    %c0_i32 = arith.constant 0 : i32
    %c0_i32_0 = arith.constant 0 : i32
    %c0_i32_1 = arith.constant 0 : i32
    return %c0_i32, %c0_i32_0 : i32, i32
  }
  func.func @transform_5(%arg0: i32) -> (i32, i32) {
    %c0_i32 = arith.constant 0 : i32
    %c0_i32_0 = arith.constant 0 : i32
    return %c0_i32, %arg0 : i32, i32
  }
}

</mosaic_0001>

<bundles_post_ra>
// kernel: tpu_custom_call.1
= control target key start
LH: loop header
LB: loop body
LE: loop exit
PB: predicated region body
PF: predicated region fallthrough
CT: control target
= control target key end

     0   :  { %v580_v3 = vmov 0   ;;  %vm228_vm0 = vcmask 1040384   ;;  %s764_s0 = inlined_call_operand.vmem [shape: bf16[50,128], index: 0, kind: input, shape index: {}]   ;;  %s765_s1 = inlined_call_operand.vmem [shape: bf16[128,50], index: 1, kind: input, shape index: {}]   ;;  %s766_s2 = inlined_call_operand.vmem [shape: f32[128,1], index: 2, kind: input, shape index: {}]   ;;  %s767_s3 = inlined_call_operand.vmem [shape: f32[128,1], index: 3, kind: input, shape index: {}]   ;;  %s768_s4 = inlined_call_operand.<no memory space> [shape: f32[1,1], index: 4, kind: input, shape index: {}]   ;;  %s769_s5 = inlined_call_operand.hbm [shape: f32[1,128], index: 5, kind: output, shape index: {}]  }
   0x1   :  { %v50_v0 = vld [vmem:[%s766_s2 + $0x20] sm:$0xff]  ;;  %v48_v1 = vld [vmem:[%s766_s2 + $0x10] sm:$0xff]  ;;  %549 = vset.pattern.permute.xlu2 %v580_v3  ;;  %548 = vset.pattern.permute.xlu1 %v580_v3  ;;  %v45_v4 = vld [vmem:[%s764_s0 + $0x18] sm:$0x1] }
   0x2   :  { %v46_v2 = vld [vmem:[%s766_s2] sm:$0xff]  ;;  %547 = vset.pattern.permute.xlu0 %v580_v3  ;;  %84 = vperm.xlu2 %549, %v50_v0   ;;  %v195_v5 = vunpack.c.l.b16 %v45_v4  ;;  %v51_v8 = vld [vmem:[%s766_s2 + $0x28] sm:$0xff]  ;;  %v49_v9 = vld [vmem:[%s766_s2 + $0x18] sm:$0xff] }
   0x3   :  { %74 = vperm.xlu1 %548, %v48_v1   ;;  %64 = vperm.xlu0 %547, %v46_v2   ;;  %v47_v10 = vld [vmem:[%s766_s2 + $0x8] sm:$0xff]  ;;  %v532_v11 = vld [vmem:[%s764_s0 + $0x10] sm:$0xff] }
   0x4   :  { %v199_v6 = vpack.c.b16 %v195_v5, %v195_v5 }
   0x6   :  { %v230_v7 = vsel %vm228_vm0, %v199_v6, 0 }
   0x7   :  { %236 = vmatpush.bf16.msra.mxu0 %v230_v7  ;;  %533 = vmatpush.bf16.msra.mxu1 %v230_v7 }
   0x8   :  { %534 = vmatpush.bf16.msra.mxu2 %v230_v7  ;;  %535 = vmatpush.bf16.msra.mxu3 %v230_v7 }
   0x9   :  { %11 = vsyncpa [#allocation4], 0  ;;  %v531_v12 = vld [vmem:[%s764_s0 + $0x8] sm:$0xff]  ;;  %v54_v13 = vld [vmem:[%s766_s2 + $0x40] sm:$0xff]  ;;  %vm203_vm1 = vcmask 408576   ;;  %s581_s26 = smov [#allocation3]  }
   0xa   :  { %89 = vperm.xlu2 %549, %v51_v8   ;;  %v53_v14 = vld [vmem:[%s766_s2 + $0x38] sm:$0xff]  ;;  %v52_v15 = vld [vmem:[%s766_s2 + $0x30] sm:$0xff]  ;;  %v530_v16 = vld [vmem:[%s764_s0] sm:$0xff]  ;;  %s458_s27 = sshll.u32 %s581_s26, 4  ;;  %s459_s27 = int_to_ptr.vmem [resolvable:$true] %s458_s27 }
   0xb   :  { %79 = vperm.xlu1 %548, %v49_v9   ;;  %69 = vperm.xlu0 %547, %v47_v10   ;;  %v522_v17 = vld [vmem:[%s765_s1] sm:$0xff]  ;;  %v524_v18 = vld [vmem:[%s765_s1 + $0x10] sm:$0xff]  ;;  %v57_v21 = vld [vmem:[%s766_s2 + $0x58] sm:$0xff] }
   0xc   :  { %237 = vmatpush.bf16.msra.mxu0 %v532_v11  ;;  %536 = vmatpush.bf16.msra.mxu1 %v532_v11  ;;  %v526_v19 = vld [vmem:[%s765_s1 + $0x20] sm:$0xff]  ;;  %v528_v20 = vld [vmem:[%s765_s1 + $0x30] sm:$0xff]  ;;  %v55_v23 = vld [vmem:[%s766_s2 + $0x48] sm:$0xff] }
   0xd   :  { %537 = vmatpush.bf16.msra.mxu2 %v532_v11  ;;  %538 = vmatpush.bf16.msra.mxu3 %v532_v11  ;;  %v56_v22 = vld [vmem:[%s766_s2 + $0x50] sm:$0xff]  ;;  %v298_v24 = vld [vmem:[%s767_s3 + $0x8] sm:$0xff]  ;;  %v297_v25 = vld [vmem:[%s767_s3] sm:$0xff] }
   0xe   :  { %v58_v26 = vld [vmem:[%s766_s2 + $0x60] sm:$0xff]  ;;  %v523_v27 = vld [vmem:[%s765_s1 + $0x8] sm:$0xff]  ;;  %v525_v28 = vld [vmem:[%s765_s1 + $0x18] sm:$0xff] }
   0xf   :  { %v527_v29 = vld [vmem:[%s765_s1 + $0x28] sm:$0xff]  ;;  %v529_v30 = vld [vmem:[%s765_s1 + $0x38] sm:$0xff]  ;;  %v301_v31 = vld [vmem:[%s767_s3 + $0x20] sm:$0xff] }
  0x10   :  { %238 = vmatpush.bf16.msra.mxu0 %v531_v12  ;;  %539 = vmatpush.bf16.msra.mxu1 %v531_v12  ;;  %v300_v32 = vld [vmem:[%s767_s3 + $0x18] sm:$0xff]  ;;  %v299_v33 = vld [vmem:[%s767_s3 + $0x10] sm:$0xff]  ;;  %v302_v36 = vld [vmem:[%s767_s3 + $0x28] sm:$0xff] }
  0x11   :  { %540 = vmatpush.bf16.msra.mxu2 %v531_v12  ;;  %541 = vmatpush.bf16.msra.mxu3 %v531_v12  ;;  %v304_v34 = vld [vmem:[%s767_s3 + $0x38] sm:$0xff]  ;;  %v303_v35 = vld [vmem:[%s767_s3 + $0x30] sm:$0xff]  ;;  %v306_v38 = vld [vmem:[%s767_s3 + $0x48] sm:$0xff] }
  0x12   :  { %104 = vperm.xlu2 %549, %v54_v13   ;;  %v307_v37 = vld [vmem:[%s767_s3 + $0x50] sm:$0xff]  ;;  %v305_v39 = vld [vmem:[%s767_s3 + $0x40] sm:$0xff]  ;;  %v308_v41 = vld [vmem:[%s767_s3 + $0x58] sm:$0xff] }
  0x13   :  { %99 = vperm.xlu1 %548, %v53_v14   ;;  %94 = vperm.xlu0 %547, %v52_v15   ;;  %v60_v40 = vld [vmem:[%s766_s2 + $0x70] sm:$0xff]  ;;  %v59_v42 = vld [vmem:[%s766_s2 + $0x68] sm:$0xff]  ;;  %v61_v44 = vld [vmem:[%s766_s2 + $0x78] sm:$0xff] }
  0x14   :  { %239 = vmatpush.bf16.msra.mxu0 %v530_v16  ;;  %542 = vmatpush.bf16.msra.mxu1 %v530_v16  ;;  %v310_v43 = vld [vmem:[%s767_s3 + $0x68] sm:$0xff]  ;;  %v309_v45 = vld [vmem:[%s767_s3 + $0x60] sm:$0xff]  ;;  %v312_v46 = vld [vmem:[%s767_s3 + $0x78] sm:$0xff] }
  0x15   :  { %543 = vmatpush.bf16.msra.mxu2 %v530_v16  ;;  %544 = vmatpush.bf16.msra.mxu3 %v530_v16  ;;  %v311_v47 = vld [vmem:[%s767_s3 + $0x70] sm:$0xff] }
  0x17   :  { %513 = vmatmul.msk.bf16.vlgmr.msra.gmra.mxu0 %vm203_vm1, %v522_v17  ;;  %515 = vmatmul.msk.bf16.vlgmr.msra.gmra.mxu1 %vm203_vm1, %v524_v18 }
  0x18   :  { %517 = vmatmul.msk.bf16.vlgmr.msra.gmra.mxu2 %vm203_vm1, %v526_v19  ;;  %519 = vmatmul.msk.bf16.vlgmr.msra.gmra.mxu3 %vm203_vm1, %v528_v20 }
  0x1a   :  { %119 = vperm.xlu2 %549, %v57_v21  }
  0x1b   :  { %114 = vperm.xlu1 %548, %v56_v22   ;;  %109 = vperm.xlu0 %547, %v55_v23  }
  0x22   :  { %320 = vperm.xlu2 %549, %v298_v24  }
  0x23   :  { %315 = vperm.xlu1 %548, %v297_v25   ;;  %124 = vperm.xlu0 %547, %v58_v26  }
  0x27   :  { %514 = vmatmul.msk.bf16.gmra.mxu0 %vm203_vm1, %v523_v27  ;;  %516 = vmatmul.msk.bf16.gmra.mxu1 %vm203_vm1, %v525_v28 }
  0x28   :  { %518 = vmatmul.msk.bf16.gmra.mxu2 %vm203_vm1, %v527_v29  ;;  %520 = vmatmul.msk.bf16.gmra.mxu3 %vm203_vm1, %v529_v30 }
  0x2a   :  { %335 = vperm.xlu2 %549, %v301_v31  }
  0x2b   :  { %330 = vperm.xlu1 %548, %v300_v32   ;;  %325 = vperm.xlu0 %547, %v299_v33  }
  0x32   :  { %350 = vperm.xlu2 %549, %v304_v34  }
  0x33   :  { %345 = vperm.xlu1 %548, %v303_v35   ;;  %340 = vperm.xlu0 %547, %v302_v36  }
  0x3a   :  { %365 = vperm.xlu2 %549, %v307_v37  }
  0x3b   :  { %360 = vperm.xlu1 %548, %v306_v38   ;;  %355 = vperm.xlu0 %547, %v305_v39  }
  0x42   :  { %134 = vperm.xlu2 %549, %v60_v40  }
  0x43   :  { %370 = vperm.xlu1 %548, %v308_v41   ;;  %129 = vperm.xlu0 %547, %v59_v42  }
  0x4a   :  { %380 = vperm.xlu2 %549, %v310_v43  }
  0x4b   :  { %139 = vperm.xlu1 %548, %v61_v44   ;;  %375 = vperm.xlu0 %547, %v309_v45  }
  0x53   :  { %390 = vperm.xlu1 %548, %v312_v46   ;;  %385 = vperm.xlu0 %547, %v311_v47  }
  0x5c   :  { %v85_v48 = vpop.permute.xlu2 %84 }
  0x64   :  { %v90_v49 = vpop.permute.xlu2 %89 }
  0x6c   :  { %v105_v52 = vpop.permute.xlu2 %104 }
  0x74   :  { %v752_v57 = vpop.permute.xlu2 %119 }
  0x75   :  { %v75_v50 = vpop.permute.xlu1 %74  ;;  %v65_v51 = vpop.permute.xlu0 %64 }
  0x7c   :  { %v321_v60 = vpop.permute.xlu2 %320 }
  0x7d   :  { %v80_v53 = vpop.permute.xlu1 %79  ;;  %v70_v54 = vpop.permute.xlu0 %69 }
  0x84   :  { %v336_v1 = vpop.permute.xlu2 %335 }
  0x85   :  { %v100_v55 = vpop.permute.xlu1 %99  ;;  %v95_v56 = vpop.permute.xlu0 %94 }
  0x8c   :  { %v351_v11 = vpop.permute.xlu2 %350 }
  0x8d   :  { %v115_v58 = vpop.permute.xlu1 %114  ;;  %v110_v59 = vpop.permute.xlu0 %109 }
  0x94   :  { %v241_v61 = vpop.f32.mrf.mxu0  ;;  %v251_v62 = vpop.f32.mrf.mxu1 }
  0x95   :  { %v316_v63 = vpop.permute.xlu1 %315  ;;  %v754_v0 = vpop.permute.xlu0 %124  ;;  %v242_v12 = vadd.f32 %v241_v61, %v65_v51  ;;  %v252_v20 = vadd.f32 %v251_v62, %v85_v48 }
  0x96   :  { %v366_v35 = vpop.permute.xlu2 %365 }
  0x97   :  { %v281_v18 = vmax.f32 %v242_v12, 0.0  ;;  %v285_v28 = vmax.f32 %v252_v20, 0.0 }
  0x99   :  { %v393_v24 = vmul.f32 %v316_v63, %v281_v18  ;;  %v397_v40 = vmul.f32 %v336_v1, %v285_v28 }
  0x9b   :  { %v261_v2 = vpop.f32.mrf.mxu2  ;;  %v271_v15 = vpop.f32.mrf.mxu3 }
  0x9c   :  { %v243_v3 = vpop.f32.mrf.mxu0  ;;  %v253_v4 = vpop.f32.mrf.mxu1  ;;  %v262_v44 = vadd.f32 %v261_v2, %v105_v52 }
  0x9d   :  { %v331_v5 = vpop.permute.xlu1 %330  ;;  %v326_v6 = vpop.permute.xlu0 %325  ;;  %v244_v7 = vadd.f32 %v243_v3, %v70_v54  ;;  %v254_v32 = vadd.f32 %v253_v4, %v90_v49 }
  0x9e   :  { %v135_v63 = vpop.permute.xlu2 %134 }
  0x9f   :  { %v282_v17 = vmax.f32 %v244_v7, 0.0  ;;  %v286_v41 = vmax.f32 %v254_v32, 0.0 }
  0xa1   :  { %v394_v21 = vmul.f32 %v321_v60, %v282_v17  ;;  %v289_v60 = vmax.f32 %v262_v44, 0.0 }
  0xa3   :  { %v263_v8 = vpop.f32.mrf.mxu2  ;;  %v409_v31 = vadd.f32 %v394_v21, %v393_v24  ;;  %v273_v36 = vpop.f32.mrf.mxu3 }
  0xa4   :  { %v246_v9 = vpop.f32.mrf.mxu0  ;;  %v256_v10 = vpop.f32.mrf.mxu1 }
  0xa5   :  { %v247_v13 = vadd.f32 %v246_v9, %v75_v50  ;;  %v346_v14 = vpop.permute.xlu1 %345  ;;  %v341_v16 = vpop.permute.xlu0 %340  ;;  %v257_v33 = vadd.f32 %v256_v10, %v95_v56 }
  0xa6   :  { %v398_v45 = vmul.f32 %v341_v16, %v286_v41  ;;  %v381_v21 = vpop.permute.xlu2 %380 }
  0xa7   :  { %v283_v19 = vmax.f32 %v247_v13, 0.0  ;;  %v287_v42 = vmax.f32 %v257_v33, 0.0 }
  0xa9   :  { %v395_v25 = vmul.f32 %v326_v6, %v283_v19  ;;  %v399_v49 = vmul.f32 %v346_v14, %v287_v42 }
  0xab   :  { %v266_v22 = vpop.f32.mrf.mxu2  ;;  %v410_v37 = vadd.f32 %v409_v31, %v395_v25  ;;  %v276_v1 = vpop.f32.mrf.mxu3 }
  0xac   :  { %v248_v23 = vpop.f32.mrf.mxu0  ;;  %v258_v29 = vpop.f32.mrf.mxu1  ;;  %v267_v54 = vadd.f32 %v266_v22, %v115_v58  ;;  %v277_v13 = vadd.f32 %v276_v1, %v135_v63 }
  0xad   :  { %v249_v26 = vadd.f32 %v248_v23, %v80_v53  ;;  %v361_v27 = vpop.permute.xlu1 %360  ;;  %v356_v30 = vpop.permute.xlu0 %355  ;;  %v259_v39 = vadd.f32 %v258_v29, %v100_v55  ;;  %v264_v53 = vadd.f32 %v263_v8, %v110_v59 }
  0xae   :  { %v291_v4 = vmax.f32 %v267_v54, 0.0  ;;  %v401_v52 = vmul.f32 %v356_v30, %v289_v60  ;;  %v295_v22 = vmax.f32 %v277_v13, 0.0 }
  0xaf   :  { %v284_v34 = vmax.f32 %v249_v26, 0.0  ;;  %v288_v47 = vmax.f32 %v259_v39, 0.0  ;;  %v290_v3 = vmax.f32 %v264_v53, 0.0 }
  0xb0   :  { %v403_v10 = vmul.f32 %v366_v35, %v291_v4 }
  0xb1   :  { %v396_v38 = vmul.f32 %v331_v5, %v284_v34  ;;  %v400_v61 = vmul.f32 %v351_v11, %v288_v47  ;;  %v272_v5 = vadd.f32 %v271_v15, %v754_v0  ;;  %v402_v6 = vmul.f32 %v361_v27, %v290_v3 }
  0xb3   :  { %v411_v43 = vadd.f32 %v410_v37, %v396_v38  ;;  %v268_v50 = vpop.f32.mrf.mxu2  ;;  %v293_v11 = vmax.f32 %v272_v5, 0.0  ;;  %v278_v17 = vpop.f32.mrf.mxu3 }
  0xb4   :  { %v269_v55 = vadd.f32 %v268_v50, %v752_v57 }
  0xb5   :  { %v412_v46 = vadd.f32 %v411_v43, %v397_v40  ;;  %v371_v48 = vpop.permute.xlu1 %370  ;;  %v130_v51 = vpop.permute.xlu0 %129 }
  0xb6   :  { %v292_v9 = vmax.f32 %v269_v55, 0.0  ;;  %v274_v59 = vadd.f32 %v273_v36, %v130_v51  ;;  %v431_v36 = vstv %s768_s4  ;;  %s460_s4 = sshll.u32 %s769_s5, 4  ;;  %s461_s4 = int_to_ptr.hbm [resolvable:$true] %s460_s4 }
  0xb7   :  { %v413_v56 = vadd.f32 %v412_v46, %v398_v45 }
  0xb8   :  { %v404_v14 = vmul.f32 %v371_v48, %v292_v9  ;;  %v294_v16 = vmax.f32 %v274_v59, 0.0 }
  0xb9   :  { %v414_v62 = vadd.f32 %v413_v56, %v399_v49 }
  0xba   :  { %v406_v0 = vmul.f32 %v381_v21, %v294_v16 }
  0xbb   :  { %v415_v2 = vadd.f32 %v414_v62, %v400_v61 }
  0xbd   :  { %v416_v7 = vadd.f32 %v415_v2, %v401_v52  ;;  %v140_v8 = vpop.permute.xlu1 %139  ;;  %v376_v58 = vpop.permute.xlu0 %375 }
  0xbe   :  { %v279_v19 = vadd.f32 %v278_v17, %v140_v8  ;;  %v405_v20 = vmul.f32 %v376_v58, %v293_v11 }
  0xbf   :  { %v417_v12 = vadd.f32 %v416_v7, %v402_v6 }
  0xc0   :  { %v296_v25 = vmax.f32 %v279_v19, 0.0 }
  0xc1   :  { %v418_v57 = vadd.f32 %v417_v12, %v403_v10 }
  0xc3   :  { %v419_v18 = vadd.f32 %v418_v57, %v404_v14 }
  0xc5   :  { %v420_v15 = vadd.f32 %v419_v18, %v405_v20  ;;  %v391_v23 = vpop.permute.xlu1 %390  ;;  %v386_v24 = vpop.permute.xlu0 %385 }
  0xc6   :  { %v407_v26 = vmul.f32 %v386_v24, %v295_v22  ;;  %v408_v28 = vmul.f32 %v391_v23, %v296_v25 }
  0xc7   :  { %v421_v27 = vadd.f32 %v420_v15, %v406_v0 }
  0xc9   :  { %v422_v29 = vadd.f32 %v421_v27, %v407_v26 }
  0xcb   :  { %v423_v30 = vadd.f32 %v422_v29, %v408_v28 }
  0xcd   :  { %v424_v31 = vrot.slane %v423_v30, 4 }
  0xcf   :  { %v425_v32 = vadd.f32 %v424_v31, %v423_v30 }
  0xd1   :  { %v426_v33 = vrot.slane %v425_v32, 2 }
  0xd3   :  { %v427_v34 = vadd.f32 %v426_v33, %v425_v32 }
  0xd5   :  { %v428_v35 = vrot.slane %v427_v34, 1 }
  0xd7   :  { %v429_v37 = vadd.f32 %v428_v35, %v427_v34 }
  0xd9   :  { %v432_v38 = vadd.f32 %v431_v36, %v429_v37 }
  0xdb   :  { %v521_v39 = vmul.f32 -1.442695, %v432_v38 }
  0xdd   :  { %550 = vpow2.f32 %v521_v39 }
  0xe3   :  { %v551_v40 = vpop.eup %550 }
  0xe4   :  { %v436_v41 = vadd.f32 1.0, %v551_v40 }
  0xe6   :  { %552 = vrcp.f32 %v436_v41  ;;  %v448_v45 = vand.u32 2147483648, %v436_v41  ;;  %v446_v47 = vand.u32 2147483647, %v436_v41  ;;  %vm442_vm3 = vweird.f32 %v436_v41 }
  0xe8   :  { %v449_v50 = vor.u32 1.1754944e-38, %v448_v45  ;;  %vm447_vm5 = vcmp.eq.f32.partialorder %v446_v47, 8.507059e+37 }
  0xec   :  { %v553_v42 = vpop.eup %552 }
  0xed   :  { %v438_v43 = vmul.f32 %v553_v42, %v436_v41  ;;  %vm443_vm2 = vweird.f32 %v553_v42 }
  0xee   :  { %vm444_vm4 = vmor %vm442_vm3, %vm443_vm2 }
  0xef   :  { %v439_v44 = vsub.f32 1.0, %v438_v43 }
  0xf1   :  { %v440_v46 = vmul.f32 %v553_v42, %v439_v44 }
  0xf3   :  { %v441_v48 = vadd.f32 %v553_v42, %v440_v46 }
  0xf5   :  { %v445_v51 = vsel %vm444_vm4, %v553_v42, %v441_v48 }
  0xf6   :  { %v450_v53 = vsel %vm447_vm5, %v449_v50, %v445_v51 }
  0xf7   :  { %452 = vst [vmem:[#allocation3] sm:$0x1] %v450_v53 }
  0xf8   :  { %463 = dma.vmem_to_hbm [thread:$0]  %s459_s27, 16, %s461_s4, [#allocation4]  }
  0xf9   :  { %578 = dma.done.wait [#allocation4], 16  }
  0xfa   :  { %579 = vsyncadd [#allocation4], 4294967280 }
  0xfb   :  { %468 = vsyncpa [#allocation4], 1 }

</bundles_post_ra>
